<compile_context>
chip_gen: v6e
topology: v6e:2x2x1
jax: 0.10.0
libtpu: 0.0.40
codegen_flags: <defaults>
</compile_context>

<pallas_src>
from functools import partial

import jax
import jax.numpy as jnp
from jax import lax
from jax.experimental import pallas as pl
from jax.experimental.pallas import tpu as pltpu


def kl_distance_kernel(x_ref, w_ref, b_ref, q_ref, ent_ref, logits_ref):
    """Per-B-tile body.

    Refs (per grid step):
      x_ref      [TB, H]  VMEM   current batch tile (auto double-buffered)
      w_ref      [2, H]   VMEM   nn.Linear(H, 2).weight, as stored
      b_ref      [2]      SMEM   nn.Linear(H, 2).bias
      q_ref      [L, 2]   SMEM   softmax(label_emb @ W^T + b)    (hoisted)
      ent_ref    [L]      SMEM   sum_j q[l, j] * log q[l, j]     (hoisted)
      logits_ref [L, TB]  VMEM   lane-dense logits (transposed in wrapper)
    """
    # Single MXU pass, B on lanes: zt[j, b] = sum_h W[j, h] * x[b, h].
    zt = lax.dot_general(
        w_ref[...], x_ref[...],
        dimension_numbers=(((1,), (1,)), ((), ())),
        preferred_element_type=jnp.float32)                       # [2, TB]

    # Exact 2-class softmax via the sigmoid identity: p only depends on the
    # logit difference (bias folds into a single scalar).  No XLU reduce over
    # a 2-wide axis, no approximate reciprocal.
    d = (zt[0:1, :] - zt[1:2, :]) + (b_ref[0] - b_ref[1])         # [1, TB]
    p0 = 1.0 / (1.0 + jnp.exp(-d))                                # [1, TB]
    p1 = 1.0 - p0

    # logits[l, b] = sum_j q[l, j] * p[b, j]  -  sum_j q[l, j] * log q[l, j]
    # Unrolled over the tiny static label count as lane-dense VPU FMAs with
    # SMEM scalar coefficients -- no K=2 contraction fed to the MXU.
    num_labels = logits_ref.shape[0]
    for l in range(num_labels):
        row = q_ref[l, 0] * p0 + q_ref[l, 1] * p1 - ent_ref[l]    # [1, TB]
        logits_ref[pl.ds(l, 1), :] = row


@partial(jax.jit, static_argnames=("block_b",))
def kl_distance_forward(inputs, labels, W_weight, W_bias, label_emb_weight,
                        block_b=512):
    """Returns (loss, logits) matching KLDistance.forward."""
    B, H = inputs.shape
    L = label_emb_weight.shape[0]

    x = inputs.astype(jnp.float32)
    W = W_weight.astype(jnp.float32)                              # [2, H]
    b = W_bias.astype(jnp.float32)                                # [2]
    E = label_emb_weight.astype(jnp.float32)                      # [L, H]

    # --- Label-table branch: O(L*H), computed ONCE here instead of per tile.
    t = jnp.dot(E, W.T, precision=lax.Precision.HIGHEST) + b      # [L, 2]
    q = jax.nn.softmax(t, axis=1)                                 # [L, 2]
    # xlogy-style guard so a future VJP would not see log(0).
    ent = jnp.sum(q * jnp.log(jnp.where(q > 0.0, q, 1.0)), axis=1)  # [L]

    # --- Tile B on the grid.  Single sublane-aligned tile for small B;
    #     block_b-row tiles (multiple of 8 and 128) at production scale.
    if B <= block_b:
        tb = ((B + 7) // 8) * 8
    else:
        tb = block_b
    b_pad = pl.cdiv(B, tb) * tb
    if b_pad != B:
        x = jnp.pad(x, ((0, b_pad - B), (0, 0)))
    grid = (b_pad // tb,)

    vmem = pl.BlockSpec(memory_space=pltpu.MemorySpace.VMEM)
    smem = pl.BlockSpec(memory_space=pltpu.MemorySpace.SMEM)

    lane_logits = pl.pallas_call(
        kl_distance_kernel,
        out_shape=jax.ShapeDtypeStruct((L, b_pad), jnp.float32),
        grid=grid,
        in_specs=[
            pl.BlockSpec((tb, H), lambda i: (i, 0)),   # x tile
            vmem,                                      # W  [2, H]
            smem,                                      # b  [2]
            smem,                                      # q  [L, 2]
            smem,                                      # ent [L]
        ],
        out_specs=pl.BlockSpec((L, tb), lambda i: (0, i)),
        compiler_params=pltpu.CompilerParams(
            dimension_semantics=("parallel",)),
    )(x, W, b, q, ent)

    # Lane-dense [L, B_pad] -> module layout [B, L] (tiny: L * B * 4 bytes).
    logits = lane_logits.T[:B, :]

    # loss = sum_b q[labels[b]] . (log q[labels[b]] - p[b]) = -sum_b logits[b, labels[b]]
    # NOTE: labels are assumed in [0, L); PyTorch's embedding would raise on
    # out-of-range indices, take_along_axis clamps instead.
    lab = labels.astype(jnp.int32)[:, None]
    loss = -jnp.sum(jnp.take_along_axis(logits, lab, axis=1))
    return loss, logits


def reference(inputs, labels, W_weight, W_bias, label_emb_weight):
    """Pure-JAX reference mirroring the PyTorch module exactly.

    KLDivLoss(reduce=False) with the module feeding *probabilities* (not
    log-probs) as `input`: elt = target * (log(target) - input).
    """
    hp = lax.Precision.HIGHEST
    z = jnp.dot(inputs, W_weight.T, precision=hp) + W_bias
    p = jax.nn.softmax(z, axis=1)
    t = jnp.dot(label_emb_weight, W_weight.T, precision=hp) + W_bias
    q = jax.nn.softmax(t, axis=1)
    dists = []
    for i in range(label_emb_weight.shape[0]):
        qi = jnp.broadcast_to(q[i][None, :], p.shape)
        kl = qi * (jnp.log(qi) - p)
        dists.append(-jnp.sum(kl, axis=1, keepdims=True))
    logits = jnp.concatenate(dists, axis=1)
    q_lab = q[labels]
    loss = jnp.sum(q_lab * (jnp.log(q_lab) - p))
    return loss, logits


if __name__ == "__main__":
    B, H, L = 8, 32, 4  # batch, hidden_size, len(label_list)

    key = jax.random.PRNGKey(0)
    k1, k2, k3, k4, k5 = jax.random.split(key, 5)

    inputs = jax.random.normal(k1, (B, H), dtype=jnp.float32)
    labels = jax.random.randint(k2, (B,), 0, L, dtype=jnp.int32)

    # Deterministic synthetic parameters (shapes from the module __init__).
    W_weight = jax.random.normal(k3, (2, H), dtype=jnp.float32) * 0.1    # nn.Linear(H, 2).weight
    W_bias = jax.random.normal(k4, (2,), dtype=jnp.float32) * 0.1        # nn.Linear(H, 2).bias
    label_emb_weight = jax.random.normal(k5, (L, H), dtype=jnp.float32)  # nn.Embedding(L, H).weight

    # Small shape takes the single-tile branch (grid=(1,)); larger B uses the
    # same code path with multiple 512-row parallel grid steps.
    loss, logits = kl_distance_forward(inputs, labels, W_weight, W_bias,
                                       label_emb_weight)
    jax.block_until_ready((loss, logits))

    ref_loss, ref_logits = reference(inputs, labels, W_weight, W_bias,
                                     label_emb_weight)
    assert logits.shape == (B, L)
    # In-kernel math is now exact (sigmoid 2-class softmax, true divide, no
    # approximate reciprocal).  The remaining slack only covers possible f32
    # matmul pass-count differences between the Mosaic MXU dot and the XLA
    # reference dot; it is 2.5x tighter than the previous 5e-3.
    assert jnp.allclose(loss, ref_loss, atol=2e-3, rtol=2e-3), (loss, ref_loss)
    assert jnp.allclose(logits, ref_logits, atol=2e-3, rtol=2e-3)

    print("KERNEL_OK")
</pallas_src>

<mosaic_0001>
module attributes {stable_mosaic.version = 11 : i64} {
  func.func @kl_distance_kernel(%arg0: i32, %arg1: memref<8x32xf32, #tpu.memory_space<vmem>>, %arg2: memref<2x32xf32, #tpu.memory_space<vmem>>, %arg3: memref<2xf32, #tpu.memory_space<smem>>, %arg4: memref<4x2xf32, #tpu.memory_space<smem>>, %arg5: memref<4xf32, #tpu.memory_space<smem>>, %arg6: memref<4x8xf32, #tpu.memory_space<vmem>>) attributes {dimension_semantics = [#tpu.dimension_semantics<parallel>], iteration_bounds = array<i64: 1>, scalar_prefetch = 0 : i64, scratch_operands = 0 : i64, tpu.core_type = #tpu.core_type<tc>, window_params = [{transform_indices = @transform_0, window_bounds = array<i64: 8, 32>}, {pipeline_mode = #tpu.pipeline_mode<synchronous>, transform_indices = @transform_1, window_bounds = array<i64: 2, 32>}, {transform_indices = @transform_2, window_bounds = array<i64: 2>}, {transform_indices = @transform_3, window_bounds = array<i64: 4, 2>}, {transform_indices = @transform_4, window_bounds = array<i64: 4>}, {transform_indices = @transform_5, window_bounds = array<i64: 4, 8>}]} {
    %c0 = arith.constant 0 : index
    %c0_0 = arith.constant 0 : index
    %0 = vector.load %arg2[%c0, %c0_0] : memref<2x32xf32, #tpu.memory_space<vmem>>, vector<2x32xf32>
    %c0_1 = arith.constant 0 : index
    %c0_2 = arith.constant 0 : index
    %1 = vector.load %arg1[%c0_1, %c0_2] : memref<8x32xf32, #tpu.memory_space<vmem>>, vector<8x32xf32>
    %cst = arith.constant dense<0.000000e+00> : vector<2x8xf32>
    %2 = tpu.matmul %0, %1, %cst {dimension_numbers = #tpu.dot_dimension_numbers<[1], [1], [0], [0], [0, 0, 1, 0], [], []>} : vector<2x32xf32>, vector<8x32xf32>, vector<2x8xf32> -> vector<2x8xf32>
    %3 = vector.extract_strided_slice %2 {offsets = [0, 0], sizes = [1, 8], strides = [1, 1]} : vector<2x8xf32> to vector<1x8xf32>
    %4 = vector.extract_strided_slice %2 {offsets = [1, 0], sizes = [1, 8], strides = [1, 1]} : vector<2x8xf32> to vector<1x8xf32>
    %5 = arith.subf %3, %4 : vector<1x8xf32>
    %c0_3 = arith.constant 0 : index
    %6 = memref.load %arg3[%c0_3] : memref<2xf32, #tpu.memory_space<smem>>
    %c1 = arith.constant 1 : index
    %7 = memref.load %arg3[%c1] : memref<2xf32, #tpu.memory_space<smem>>
    %8 = arith.subf %6, %7 : f32
    %9 = vector.broadcast %8 : f32 to vector<1x8xf32>
    %10 = arith.addf %5, %9 : vector<1x8xf32>
    %cst_4 = arith.constant 0.000000e+00 : f32
    %11 = vector.broadcast %cst_4 : f32 to vector<1x8xf32>
    %12 = arith.subf %11, %10 : vector<1x8xf32>
    %13 = math.exp %12 : vector<1x8xf32>
    %cst_5 = arith.constant 1.000000e+00 : f32
    %14 = vector.broadcast %cst_5 : f32 to vector<1x8xf32>
    %15 = arith.addf %14, %13 : vector<1x8xf32>
    %cst_6 = arith.constant 1.000000e+00 : f32
    %16 = vector.broadcast %cst_6 : f32 to vector<1x8xf32>
    %17 = arith.divf %16, %15 : vector<1x8xf32>
    %cst_7 = arith.constant 1.000000e+00 : f32
    %18 = vector.broadcast %cst_7 : f32 to vector<1x8xf32>
    %19 = arith.subf %18, %17 : vector<1x8xf32>
    %c0_8 = arith.constant 0 : index
    %c0_9 = arith.constant 0 : index
    %20 = memref.load %arg4[%c0_8, %c0_9] : memref<4x2xf32, #tpu.memory_space<smem>>
    %21 = vector.broadcast %20 : f32 to vector<1x8xf32>
    %22 = arith.mulf %21, %17 : vector<1x8xf32>
    %c0_10 = arith.constant 0 : index
    %c1_11 = arith.constant 1 : index
    %23 = memref.load %arg4[%c0_10, %c1_11] : memref<4x2xf32, #tpu.memory_space<smem>>
    %24 = vector.broadcast %23 : f32 to vector<1x8xf32>
    %25 = arith.mulf %24, %19 : vector<1x8xf32>
    %26 = arith.addf %22, %25 : vector<1x8xf32>
    %c0_12 = arith.constant 0 : index
    %27 = memref.load %arg5[%c0_12] : memref<4xf32, #tpu.memory_space<smem>>
    %28 = vector.broadcast %27 : f32 to vector<1x8xf32>
    %29 = arith.subf %26, %28 : vector<1x8xf32>
    %c0_13 = arith.constant 0 : index
    %c0_14 = arith.constant 0 : index
    %30 = vector.load %arg6[%c0_13, %c0_14] : memref<4x8xf32, #tpu.memory_space<vmem>>, vector<1x8xf32>
    tpu.vector_store %arg6[%c0_13, %c0_14], %29 {strides = array<i32>} : memref<4x8xf32, #tpu.memory_space<vmem>>, vector<1x8xf32>,
    %c1_15 = arith.constant 1 : index
    %c0_16 = arith.constant 0 : index
    %31 = memref.load %arg4[%c1_15, %c0_16] : memref<4x2xf32, #tpu.memory_space<smem>>
    %32 = vector.broadcast %31 : f32 to vector<1x8xf32>
    %33 = arith.mulf %32, %17 : vector<1x8xf32>
    %c1_17 = arith.constant 1 : index
    %c1_18 = arith.constant 1 : index
    %34 = memref.load %arg4[%c1_17, %c1_18] : memref<4x2xf32, #tpu.memory_space<smem>>
    %35 = vector.broadcast %34 : f32 to vector<1x8xf32>
    %36 = arith.mulf %35, %19 : vector<1x8xf32>
    %37 = arith.addf %33, %36 : vector<1x8xf32>
    %c1_19 = arith.constant 1 : index
    %38 = memref.load %arg5[%c1_19] : memref<4xf32, #tpu.memory_space<smem>>
    %39 = vector.broadcast %38 : f32 to vector<1x8xf32>
    %40 = arith.subf %37, %39 : vector<1x8xf32>
    %c1_20 = arith.constant 1 : index
    %c0_21 = arith.constant 0 : index
    %41 = vector.load %arg6[%c1_20, %c0_21] : memref<4x8xf32, #tpu.memory_space<vmem>>, vector<1x8xf32>
    tpu.vector_store %arg6[%c1_20, %c0_21], %40 {strides = array<i32>} : memref<4x8xf32, #tpu.memory_space<vmem>>, vector<1x8xf32>,
    %c2 = arith.constant 2 : index
    %c0_22 = arith.constant 0 : index
    %42 = memref.load %arg4[%c2, %c0_22] : memref<4x2xf32, #tpu.memory_space<smem>>
    %43 = vector.broadcast %42 : f32 to vector<1x8xf32>
    %44 = arith.mulf %43, %17 : vector<1x8xf32>
    %c2_23 = arith.constant 2 : index
    %c1_24 = arith.constant 1 : index
    %45 = memref.load %arg4[%c2_23, %c1_24] : memref<4x2xf32, #tpu.memory_space<smem>>
    %46 = vector.broadcast %45 : f32 to vector<1x8xf32>
    %47 = arith.mulf %46, %19 : vector<1x8xf32>
    %48 = arith.addf %44, %47 : vector<1x8xf32>
    %c2_25 = arith.constant 2 : index
    %49 = memref.load %arg5[%c2_25] : memref<4xf32, #tpu.memory_space<smem>>
    %50 = vector.broadcast %49 : f32 to vector<1x8xf32>
    %51 = arith.subf %48, %50 : vector<1x8xf32>
    %c2_26 = arith.constant 2 : index
    %c0_27 = arith.constant 0 : index
    %52 = vector.load %arg6[%c2_26, %c0_27] : memref<4x8xf32, #tpu.memory_space<vmem>>, vector<1x8xf32>
    tpu.vector_store %arg6[%c2_26, %c0_27], %51 {strides = array<i32>} : memref<4x8xf32, #tpu.memory_space<vmem>>, vector<1x8xf32>,
    %c3 = arith.constant 3 : index
    %c0_28 = arith.constant 0 : index
    %53 = memref.load %arg4[%c3, %c0_28] : memref<4x2xf32, #tpu.memory_space<smem>>
    %54 = vector.broadcast %53 : f32 to vector<1x8xf32>
    %55 = arith.mulf %54, %17 : vector<1x8xf32>
    %c3_29 = arith.constant 3 : index
    %c1_30 = arith.constant 1 : index
    %56 = memref.load %arg4[%c3_29, %c1_30] : memref<4x2xf32, #tpu.memory_space<smem>>
    %57 = vector.broadcast %56 : f32 to vector<1x8xf32>
    %58 = arith.mulf %57, %19 : vector<1x8xf32>
    %59 = arith.addf %55, %58 : vector<1x8xf32>
    %c3_31 = arith.constant 3 : index
    %60 = memref.load %arg5[%c3_31] : memref<4xf32, #tpu.memory_space<smem>>
    %61 = vector.broadcast %60 : f32 to vector<1x8xf32>
    %62 = arith.subf %59, %61 : vector<1x8xf32>
    %c3_32 = arith.constant 3 : index
    %c0_33 = arith.constant 0 : index
    %63 = vector.load %arg6[%c3_32, %c0_33] : memref<4x8xf32, #tpu.memory_space<vmem>>, vector<1x8xf32>
    tpu.vector_store %arg6[%c3_32, %c0_33], %62 {strides = array<i32>} : memref<4x8xf32, #tpu.memory_space<vmem>>, vector<1x8xf32>,
    return
  }
  func.func @transform_0(%arg0: i32) -> (i32, i32) {
    %c0_i32 = arith.constant 0 : i32
    %c0_i32_0 = arith.constant 0 : i32
    return %arg0, %c0_i32 : i32, i32
  }
  func.func @transform_1(%arg0: i32) -> (i32, i32) {
    %c0_i32 = arith.constant 0 : i32
    %c0_i32_0 = arith.constant 0 : i32
    %c0_i32_1 = arith.constant 0 : i32
    return %c0_i32, %c0_i32_0 : i32, i32
  }
  func.func @transform_2(%arg0: i32) -> i32 {
    %c0_i32 = arith.constant 0 : i32
    %c0_i32_0 = arith.constant 0 : i32
    return %c0_i32 : i32
  }
  func.func @transform_3(%arg0: i32) -> (i32, i32) {
    %c0_i32 = arith.constant 0 : i32
    %c0_i32_0 = arith.constant 0 : i32
    %c0_i32_1 = arith.constant 0 : i32
    return %c0_i32, %c0_i32_0 : i32, i32
  }
  func.func @transform_4(%arg0: i32) -> i32 {
    %c0_i32 = arith.constant 0 : i32
    %c0_i32_0 = arith.constant 0 : i32
    return %c0_i32 : i32
  }
  func.func @transform_5(%arg0: i32) -> (i32, i32) {
    %c0_i32 = arith.constant 0 : i32
    %c0_i32_0 = arith.constant 0 : i32
    return %c0_i32, %arg0 : i32, i32
  }
}

</mosaic_0001>

<bundles_post_ra>
// kernel: kl_distance_forward.1
= control target key start
LH: loop header
LB: loop body
LE: loop exit
PB: predicated region body
PF: predicated region fallthrough
CT: control target
= control target key end

     0   :  { %10 = vsyncpa [#allocation3], 0  ;;  %s345_s0 = inlined_call_operand.vmem [shape: f32[8,32], index: 0, kind: input, shape index: {}]   ;;  %s346_s1 = inlined_call_operand.vmem [shape: f32[2,32], index: 1, kind: input, shape index: {}]   ;;  %s347_s2 = inlined_call_operand.vmem [shape: f32[2], index: 2, kind: input, shape index: {}]   ;;  %s348_s3 = inlined_call_operand.vmem [shape: f32[4,2], index: 3, kind: input, shape index: {}]   ;;  %s349_s4 = inlined_call_operand.vmem [shape: f32[4], index: 4, kind: input, shape index: {}]   ;;  %s350_s5 = inlined_call_operand.vmem [shape: f32[4,8], index: 5, kind: output, shape index: {}]  }
   0x1   :  { %11 = vsyncpa [#allocation5], 0  ;;  %s32_s20 = sshll.u32 %s348_s3, 4  ;;  %s22_s23 = sshll.u32 %s347_s2, 4  ;;  %s33_s20 = int_to_ptr.vmem [resolvable:$true] %s32_s20  ;;  %s23_s23 = int_to_ptr.vmem [resolvable:$true] %s22_s23 }
   0x2   :  { %s231_s24 = scalar_lea.vmem %s33_s20, 64  ;;  %p236_p1 = scmp.lt.s32.totalorder %s33_s20, %s33_s20 }
   0x3   :  { %p232_p0 = scmp.ne.s32.totalorder %s33_s20, %s231_s24  ;;  %p237_p2 = scmp.lt.s32.totalorder %s231_s24, %s231_s24 }
   0x5   :  { %p238_p3 = por %p237_p2, %p236_p1 }
   0x7   :  { %p239_p4 = pnand %p238_p3, %p232_p0 }
   0x9   :  { %242 = shalt.err (!%p239_p4)
}
   0xa   :  { %s271_s25 = smov [#allocation4]   ;;  %s243_s26 = scalar_lea.vmem %s23_s23, 16 }
   0xb   :  { %35 = dma.vmem_to_smem %s33_s20, 64, %s271_s25, [#allocation5]  }
   0xc   :  { %p244_p5 = scmp.ne.s32.totalorder %s23_s23, %s243_s26  ;;  %p248_p6 = scmp.lt.s32.totalorder %s23_s23, %s23_s23 }
   0xd   :  { %p249_p7 = scmp.lt.s32.totalorder %s243_s26, %s243_s26 }
   0xf   :  { %p250_p8 = por %p249_p7, %p248_p6 }
  0x11   :  { %p251_p9 = pnand %p250_p8, %p244_p5 }
  0x13   :  { %254 = shalt.err (!%p251_p9)
}
  0x14   :  { %s272_s3 = smov [#allocation2]   ;;  %s42_s28 = sshll.u32 %s349_s4, 4  ;;  %s43_s28 = int_to_ptr.vmem [resolvable:$true] %s42_s28 }
  0x15   :  { %25 = dma.vmem_to_smem %s23_s23, 16, %s272_s3, [#allocation3]  }
  0x16   :  { %s255_s29 = scalar_lea.vmem %s43_s28, 16  ;;  %p260_p11 = scmp.lt.s32.totalorder %s43_s28, %s43_s28 }
  0x17   :  { %p256_p10 = scmp.ne.s32.totalorder %s43_s28, %s255_s29  ;;  %p261_p12 = scmp.lt.s32.totalorder %s255_s29, %s255_s29 }
  0x19   :  { %p262_p13 = por %p261_p12, %p260_p11 }
  0x1b   :  { %p263_p0 = pnand %p262_p13, %p256_p10 }
  0x1d   :  { %266 = shalt.err (!%p263_p0)
}
  0x1e   :  { %s273_s30 = smov [#allocation6]  }
  0x1f   :  { %45 = dma.vmem_to_smem %s43_s28, 16, %s273_s30, [#allocation5]  }
  0x20   :  { %267 = dma.done.wait [#allocation3], 16  }
  0x21   :  { %268 = vsyncadd [#allocation3], 4294967280 }
  0x22   :  { %269 = dma.done.wait [#allocation5], 80  }
  0x23   :  { %270 = vsyncadd [#allocation5], 4294967216 }
  0x24   :  { %55 = sfence }
  0x25   :  { %v57_v0 = vld [vmem:[%s345_s0] sm:$0xff]  ;;  %vm58_vm0 = vcmask 261120   ;;  %v274_v1 = vmov 0.0   ;;  %vm275_vm1 = vmmov 0   ;;  %s139_s9 = sld [smem:[#allocation2]]  ;;  %vm161_vm2 = vcmask 57344  }
  0x26   :  { %217 = vmatprep.subr.mxu0 %v274_v1  ;;  %219 = vmatprep.mubr.msk.f32.mxu0 %vm275_vm1, %v274_v1  ;;  %v56_v2 = vld [vmem:[%s346_s1] sm:$0x3]  ;;  %s204_s10 = sld [smem:[#allocation2 + $0x1]] }
  0x27   :  { %218 = vmatpush3.xpose.msk.msra.mxu0 %vm58_vm0, %v57_v0  ;;  %s151_s0 = sld [smem:[#allocation4]] }
  0x28   :  { %s206_s12 = sld [smem:[#allocation4 + $0x80]] }
  0x29   :  { %s205_s13 = sld [smem:[#allocation4 + $0x1]] }
  0x2a   :  { %220 = vmatmul.mubr.msk.f32.vlgmr.msra.gmra.mxu0 %vm58_vm0, %v56_v2  ;;  %s207_s1 = sld [smem:[#allocation4 + $0x81]] }
  0x2b   :  { %s209_s14 = sld [smem:[#allocation4 + $0x100]] }
  0x2c   :  { %s141_s11 = ssub.f32 %s139_s9, %s204_s10 }
  0x2d   :  { %s210_s15 = sld [smem:[#allocation4 + $0x101]]  ;;  %v152_v13 = vstv %s151_s0 }
  0x2e   :  { %v142_v5 = vstv %s141_s11  ;;  %s212_s16 = sld [smem:[#allocation4 + $0x180]]  ;;  %v164_v14 = vstv %s206_s12 }
  0x2f   :  { %s213_s17 = sld [smem:[#allocation4 + $0x181]]  ;;  %v155_v18 = vstv %s205_s13 }
  0x30   :  { %s321_s18 = sld [smem:[#allocation6]]  ;;  %v167_v19 = vstv %s207_s1 }
  0x31   :  { %s323_s19 = sld [smem:[#allocation6 + $0x1]]  ;;  %v175_v15 = vstv %s209_s14 }
  0x32   :  { %s325_s20 = sld [smem:[#allocation6 + $0x2]] }
  0x33   :  { %s327_s21 = sld [smem:[#allocation6 + $0x3]]  ;;  %v178_v20 = vstv %s210_s15 }
  0x34   :  { %v186_v16 = vstv %s212_s16 }
  0x35   :  { %v189_v21 = vstv %s213_s17 }
  0x36   :  { %v159_v31 = vstv %s321_s18 }
  0x37   :  { %v171_v32 = vstv %s323_s19 }
  0x38   :  { %v182_v33 = vstv %s325_s20 }
  0x39   :  { %v193_v34 = vstv %s327_s21 }
  0xea   :  { %v131_v3 = vpop.f32.mrf.mxu0 }
  0xeb   :  { %v136_v4 = vrot.slane %v131_v3, 1 }
  0xec   :  { %v221_v6 = vpop.f32.mrf.mxu0 }
  0xed   :  { %v138_v7 = vsub.f32 %v131_v3, %v136_v4 }
  0xef   :  { %v143_v8 = vadd.f32 %v142_v5, %v138_v7 }
  0xf1   :  { %v144_v9 = vsub.f32 0.0, %v143_v8 }
  0xf3   :  { %v145_v10 = vmul.f32 1.442695, %v144_v9 }
  0xf5   :  { %227 = vpow2.f32 %v145_v10 }
 0x102   :  { %v228_v11 = vpop.eup %227 }
 0x103   :  { %v147_v12 = vadd.f32 1.0, %v228_v11 }
 0x105   :  { %229 = vrcp.f32 %v147_v12 }
 0x112   :  { %v230_v17 = vpop.eup %229 }
 0x113   :  { %v150_v22 = vsub.f32 1.0, %v230_v17  ;;  %v153_v23 = vmul.f32 %v230_v17, %v152_v13  ;;  %v165_v24 = vmul.f32 %v230_v17, %v164_v14  ;;  %v176_v25 = vmul.f32 %v230_v17, %v175_v15 }
 0x114   :  { %v187_v26 = vmul.f32 %v230_v17, %v186_v16 }
 0x115   :  { %v156_v27 = vmul.f32 %v155_v18, %v150_v22  ;;  %v168_v28 = vmul.f32 %v167_v19, %v150_v22  ;;  %v179_v29 = vmul.f32 %v178_v20, %v150_v22  ;;  %v190_v30 = vmul.f32 %v189_v21, %v150_v22 }
 0x117   :  { %v157_v35 = vadd.f32 %v156_v27, %v153_v23  ;;  %v169_v36 = vadd.f32 %v168_v28, %v165_v24  ;;  %v180_v37 = vadd.f32 %v179_v29, %v176_v25  ;;  %v191_v38 = vadd.f32 %v190_v30, %v187_v26 }
 0x119   :  { %v160_v39 = vsub.f32 %v157_v35, %v159_v31  ;;  %v172_v40 = vsub.f32 %v169_v36, %v171_v32  ;;  %v183_v41 = vsub.f32 %v180_v37, %v182_v33  ;;  %v194_v42 = vsub.f32 %v191_v38, %v193_v34 }
 0x11b   :  { %162 = vst.msk [vmem:[%s350_s5] sm:$0x1] %vm161_vm2, %v160_v39  ;;  %173 = vst.msk [vmem:[%s350_s5 + $0x1] sm:$0x1] %vm161_vm2, %v172_v40 }
 0x11c   :  { %184 = vst.msk [vmem:[%s350_s5 + $0x2] sm:$0x1] %vm161_vm2, %v183_v41  ;;  %195 = vst.msk [vmem:[%s350_s5 + $0x3] sm:$0x1] %vm161_vm2, %v194_v42 }
 0x11d   :  { %200 = vsyncpa [#allocation3], 1 }
 0x11e   :  { %201 = vsyncpa [#allocation5], 1 }

</bundles_post_ra>
